<compile_context>
chip_gen: v5e
topology: v5e:2x2
jax: 0.10.0
libtpu: 0.0.40
codegen_flags: <defaults>
</compile_context>

<pallas_src>
import functools

import jax
import jax.numpy as jnp
import numpy as np
from jax.experimental import pallas as pl
from jax.experimental.pallas import tpu as pltpu

IGNORE_INDEX = -100

# Estimated per-grid-step VMEM footprint target.  Conservative so the kernel
# clears v7x's 32 MiB scoped / 64 MiB physical VMEM with ~2x headroom while
# still giving >100K pixels per tile for typical small-C segmentation heads.
_TILE_BUDGET_BYTES = 12 << 20
_VMEM_LIMIT_BYTES = 30 << 20       # explicit scoped-VMEM limit for this kernel
_F32_INTERMEDIATES = 12            # live (R,128) f32 temporaries assumed in the body


def _focal_kernel(logits_ref, tgt_ref, w_ref, num_ref, den_ref, *,
                  n_classes, rows_total, mask_rows):
    """One grid step: R x 128 pixels of one batch element, all C classes resident.

    logits_ref: (1, C, R, 128)  native dtype (bf16/f32), pixels on (sublane, lane)
    tgt_ref:    (1, R, 128)     int32 targets
    w_ref:      (C,)            f32 class weights in SMEM (scalar reads)
    num_ref:    (1, 1, R, 128)  f32 per-pixel partial sums of scale * (-log p_t)
    den_ref:    (1, 1, R, 128)  f32 per-pixel partial sums of scale
    """
    s_idx = pl.program_id(1)
    t_idx = pl.program_id(2)

    @pl.when(t_idx == 0)
    def _init():
        num_ref[...] = jnp.zeros_like(num_ref)
        den_ref[...] = jnp.zeros_like(den_ref)

    tgt = tgt_ref[0]                              # (R, 128) int32
    tile_rows = tgt.shape[0]

    if mask_rows:
        # The last tile of a shard may overrun the (padded) row extent; mask by
        # global row index instead of materializing more padding in HBM.
        row_blk = s_idx * pl.num_programs(2) + t_idx
        row_id = row_blk * tile_rows + jax.lax.broadcasted_iota(
            jnp.int32, tgt.shape, 0)
        row_ok = row_id < rows_total
    else:
        row_ok = None                             # exact tiling: nothing to mask

    def load(c):
        xc = logits_ref[0, c].astype(jnp.float32)           # (R, 128)
        if mask_rows:
            xc = jnp.where(row_ok, xc, 0.0)                 # sanitize overrun rows
        return xc

    # Pass 1 over classes (dense elementwise combines, no cross-lane reduce):
    # running max, target-class logit gather, weight[target] gather.
    x0 = load(0)
    m = x0
    sel = tgt == 0
    logit_t = jnp.where(sel, x0, 0.0)
    wt = jnp.where(sel, w_ref[0], 0.0)
    for c in range(1, n_classes):
        xc = load(c)
        m = jnp.maximum(m, xc)
        sel = tgt == c
        logit_t = jnp.where(sel, xc, logit_t)
        wt = jnp.where(sel, w_ref[c], wt)

    # Pass 2: sum(exp(x - m)).  Re-reads the VMEM tile (vld is cheap) instead of
    # keeping C f32 copies of the block alive.
    sumexp = jnp.exp(x0 - m)
    for c in range(1, n_classes):
        sumexp = sumexp + jnp.exp(load(c) - m)

    mlp = (m - logit_t) + jnp.log(sumexp)         # -log p_t  (>= 0)
    pt = jnp.exp(-mlp)                            # one EUP op, no divide

    valid = tgt != IGNORE_INDEX
    if mask_rows:
        valid = valid & row_ok

    scale = (1.0 - pt) * (1.0 - pt) * wt
    num_ref[0, 0] += jnp.where(valid, scale * mlp, 0.0)
    den_ref[0, 0] += jnp.where(valid, scale, 0.0)


def _round_up(x, m):
    return (x + m - 1) // m * m


@functools.partial(jax.jit, static_argnames=("tile_budget_bytes",))
def weighted_focal_loss(logits_nchw, target_nhw, weight, *,
                        tile_budget_bytes=_TILE_BUDGET_BYTES):
    """logits_nchw: (N, C, H, W) float; target_nhw: (N, H, W) int; weight: (C,) float."""
    N, C, H, W = logits_nchw.shape
    HW = H * W
    itemsize = jnp.dtype(logits_nchw.dtype).itemsize

    # ---- layout: pixels on (sublane=rows, lane=128); class axis leading -------
    # Pad H*W up to a multiple of 8*128 only when needed (typical segmentation
    # shapes already are); padded pixels carry ignore_index and zero logits.
    HW_m = _round_up(HW, 8 * 128)
    rows_m = HW_m // 128

    # ---- tile sizing: VMEM-budget driven rows per tile (multiple of 8) --------
    bytes_per_row = 128 * (
        2 * C * itemsize            # logits block, double-buffered
        + 2 * 4                     # int32 target block, double-buffered
        + 2 * 2 * 4                 # f32 num/den accumulators (x2 buffers)
        + _F32_INTERMEDIATES * 4)   # live f32 intermediates in the body
    r_budget = max(8, (tile_budget_bytes // bytes_per_row) // 8 * 8)

    # Shard the row space across two "parallel" grid slots so both v7x
    # TensorCores get work even when N == 1 (neutral on single-TC v5e/v6e).
    n_shards = 2 if rows_m >= 16 else 1
    rows_per_shard = pl.cdiv(rows_m, n_shards)
    tile_rows = min(r_budget, _round_up(rows_per_shard, 8))     # always <= rows_m
    n_tiles = pl.cdiv(rows_per_shard, tile_rows)
    mask_rows = n_shards * n_tiles * tile_rows > rows_m
    max_rb = pl.cdiv(rows_m, tile_rows) - 1     # clamp fully-out-of-range tail tiles

    logits = logits_nchw.reshape(N, C, HW)
    target = target_nhw.reshape(N, HW).astype(jnp.int32)
    if HW_m != HW:
        pad = HW_m - HW
        logits = jnp.pad(logits, ((0, 0), (0, 0), (0, pad)))
        target = jnp.pad(target, ((0, 0), (0, pad)), constant_values=IGNORE_INDEX)
    logits = logits.reshape(N, C, rows_m, 128)
    target = target.reshape(N, rows_m, 128)
    w1d = weight.astype(jnp.float32)

    def row_block(s, t):
        # Fully-out-of-range tail blocks (ragged shard split) are clamped to the
        # last valid block; their contribution is zeroed in-kernel via row_ok.
        return jnp.minimum(s * n_tiles + t, max_rb)

    kernel = functools.partial(_focal_kernel, n_classes=C, rows_total=rows_m,
                               mask_rows=mask_rows)

    num_p, den_p = pl.pallas_call(
        kernel,
        out_shape=(jax.ShapeDtypeStruct((N, n_shards, tile_rows, 128), jnp.float32),
                   jax.ShapeDtypeStruct((N, n_shards, tile_rows, 128), jnp.float32)),
        grid_spec=pltpu.PrefetchScalarGridSpec(
            num_scalar_prefetch=0,
            grid=(N, n_shards, n_tiles),
            in_specs=[
                pl.BlockSpec((1, C, tile_rows, 128),
                             lambda n, s, t: (n, 0, row_block(s, t), 0)),
                pl.BlockSpec((1, tile_rows, 128),
                             lambda n, s, t: (n, row_block(s, t), 0)),
                pl.BlockSpec(memory_space=pltpu.MemorySpace.SMEM),  # (C,) weights
            ],
            out_specs=[
                pl.BlockSpec((1, 1, tile_rows, 128), lambda n, s, t: (n, s, 0, 0)),
                pl.BlockSpec((1, 1, tile_rows, 128), lambda n, s, t: (n, s, 0, 0)),
            ],
        ),
        compiler_params=pltpu.CompilerParams(
            dimension_semantics=("parallel", "parallel", "arbitrary"),
            vmem_limit_bytes=_VMEM_LIMIT_BYTES),
    )(logits, target, w1d)

    # Tiny final reduction + divide in JAX.
    # NOTE: if every pixel is ignore_index, den == 0 and this yields NaN/Inf,
    # matching the PyTorch module's behavior.
    return (jnp.sum(num_p) / jnp.sum(den_p)).astype(jnp.float32)


def _reference(logits_nchw, target_nhw, weight):
    """Pure-JAX reference mirroring the PyTorch module."""
    N, C, H, W = logits_nchw.shape
    x = jnp.transpose(logits_nchw, (0, 2, 3, 1)).reshape(-1, C).astype(jnp.float32)
    t = target_nhw.reshape(-1).astype(jnp.int32)
    logp = jax.nn.log_softmax(x, axis=-1)
    mlp = -jnp.take_along_axis(logp, jnp.clip(t, 0, C - 1)[:, None], axis=-1)[:, 0]
    valid = t != IGNORE_INDEX
    mlp = jnp.where(valid, mlp, 0.0)
    pt = jnp.exp(-mlp)
    wt = jnp.where(valid, weight[jnp.clip(t, 0, C - 1)], 0.0)
    scale = (1.0 - pt) ** 2 * wt
    return jnp.sum(scale * mlp) / jnp.sum(scale)


if __name__ == "__main__":
    key = jax.random.PRNGKey(0)
    k1, k2, k3, k4, k5, k6 = jax.random.split(key, 6)

    # --- Test 1: small f32 input with ignore_index pixels (single tile) ------
    N, C, H, W = 2, 4, 16, 16
    logits = jax.random.normal(k1, (N, C, H, W), dtype=jnp.float32)
    target = jax.random.randint(k2, (N, H, W), 0, C, dtype=jnp.int32)
    target = target.at[0, 0, :5].set(IGNORE_INDEX)
    weight = jnp.linspace(0.5, 2.0, C, dtype=jnp.float32)
    loss = weighted_focal_loss(logits, target, weight)
    jax.block_until_ready(loss)
    np.testing.assert_allclose(np.asarray(loss),
                               np.asarray(_reference(logits, target, weight)),
                               rtol=1e-5, atol=1e-5)

    # --- Test 2: bf16 logits, dual-shard grid + masked partial tail tile -----
    N2, C2, H2, W2 = 2, 4, 48, 48
    logits2 = jax.random.normal(k3, (N2, C2, H2, W2), dtype=jnp.bfloat16)
    target2 = jax.random.randint(k4, (N2, H2, W2), 0, C2, dtype=jnp.int32)
    target2 = target2.at[1, 3, 7].set(IGNORE_INDEX)
    weight2 = jnp.linspace(0.25, 1.75, C2, dtype=jnp.float32)
    loss2 = weighted_focal_loss(logits2, target2, weight2)
    jax.block_until_ready(loss2)
    np.testing.assert_allclose(np.asarray(loss2),
                               np.asarray(_reference(logits2, target2, weight2)),
                               rtol=1e-3, atol=1e-3)

    # --- Test 3: H*W not a multiple of 128 (wrapper pad path), odd C ---------
    N3, C3, H3, W3 = 1, 5, 10, 10
    logits3 = jax.random.normal(k5, (N3, C3, H3, W3), dtype=jnp.float32)
    target3 = jax.random.randint(k6, (N3, H3, W3), 0, C3, dtype=jnp.int32)
    weight3 = jnp.linspace(1.0, 3.0, C3, dtype=jnp.float32)
    loss3 = weighted_focal_loss(logits3, target3, weight3)
    jax.block_until_ready(loss3)
    np.testing.assert_allclose(np.asarray(loss3),
                               np.asarray(_reference(logits3, target3, weight3)),
                               rtol=1e-5, atol=1e-5)

    # --- Test 4: tiny tile budget -> multi-tile accumulation + clamped tail --
    logits4 = logits2.astype(jnp.float32)
    loss4 = weighted_focal_loss(logits4, target2, weight2,
                                tile_budget_bytes=64 * 1024)
    jax.block_until_ready(loss4)
    np.testing.assert_allclose(np.asarray(loss4),
                               np.asarray(_reference(logits4, target2, weight2)),
                               rtol=1e-5, atol=1e-5)

    print("KERNEL_OK")
</pallas_src>

<mosaic_0001>
module attributes {stable_mosaic.version = 11 : i64} {
  func.func @_focal_kernel(%arg0: i32, %arg1: i32, %arg2: i32, %arg3: memref<1x4x8x128xf32, #tpu.memory_space<vmem>>, %arg4: memref<1x8x128xi32, #tpu.memory_space<vmem>>, %arg5: memref<4xf32, #tpu.memory_space<smem>>, %arg6: memref<1x1x8x128xf32, #tpu.memory_space<vmem>>, %arg7: memref<1x1x8x128xf32, #tpu.memory_space<vmem>>) attributes {dimension_semantics = [#tpu.dimension_semantics<parallel>, #tpu.dimension_semantics<parallel>, #tpu.dimension_semantics<arbitrary>], iteration_bounds = array<i64: 2, 1, 1>, scalar_prefetch = 0 : i64, scratch_operands = 0 : i64, tpu.core_type = #tpu.core_type<tc>, window_params = [{transform_indices = @transform_0, window_bounds = array<i64: 1, 4, 8, 128>}, {transform_indices = @transform_1, window_bounds = array<i64: 1, 8, 128>}, {transform_indices = @transform_2, window_bounds = array<i64: 4>}, {transform_indices = @transform_3, window_bounds = array<i64: 1, 1, 8, 128>}, {transform_indices = @transform_4, window_bounds = array<i64: 1, 1, 8, 128>}]} {
    %c0_i32 = arith.constant 0 : i32
    %0 = arith.cmpi eq, %arg2, %c0_i32 : i32
    %1 = arith.extui %0 : i1 to i32
    %c0_i32_0 = arith.constant 0 : i32
    %2 = arith.cmpi ne, %1, %c0_i32_0 : i32
    scf.if %2 {
      %cst_55 = arith.constant 0.000000e+00 : f32
      %90 = vector.broadcast %cst_55 : f32 to vector<1x1x8x128xf32>
      %c0_56 = arith.constant 0 : index
      %c0_57 = arith.constant 0 : index
      %c0_58 = arith.constant 0 : index
      %c0_59 = arith.constant 0 : index
      %91 = vector.load %arg6[%c0_56, %c0_57, %c0_58, %c0_59] : memref<1x1x8x128xf32, #tpu.memory_space<vmem>>, vector<1x1x8x128xf32>
      tpu.vector_store %arg6[%c0_56, %c0_57, %c0_58, %c0_59], %90 {strides = array<i32>} : memref<1x1x8x128xf32, #tpu.memory_space<vmem>>, vector<1x1x8x128xf32>,
      %cst_60 = arith.constant 0.000000e+00 : f32
      %92 = vector.broadcast %cst_60 : f32 to vector<1x1x8x128xf32>
      %c0_61 = arith.constant 0 : index
      %c0_62 = arith.constant 0 : index
      %c0_63 = arith.constant 0 : index
      %c0_64 = arith.constant 0 : index
      %93 = vector.load %arg7[%c0_61, %c0_62, %c0_63, %c0_64] : memref<1x1x8x128xf32, #tpu.memory_space<vmem>>, vector<1x1x8x128xf32>
      tpu.vector_store %arg7[%c0_61, %c0_62, %c0_63, %c0_64], %92 {strides = array<i32>} : memref<1x1x8x128xf32, #tpu.memory_space<vmem>>, vector<1x1x8x128xf32>,
    } else {
    }
    %c0 = arith.constant 0 : index
    %c0_1 = arith.constant 0 : index
    %c0_2 = arith.constant 0 : index
    %3 = vector.load %arg4[%c0, %c0_1, %c0_2] : memref<1x8x128xi32, #tpu.memory_space<vmem>>, vector<1x8x128xi32>
    %4 = vector.shape_cast %3 : vector<1x8x128xi32> to vector<8x128xi32>
    %c0_3 = arith.constant 0 : index
    %c0_4 = arith.constant 0 : index
    %c0_5 = arith.constant 0 : index
    %c0_6 = arith.constant 0 : index
    %5 = vector.load %arg3[%c0_3, %c0_4, %c0_5, %c0_6] : memref<1x4x8x128xf32, #tpu.memory_space<vmem>>, vector<1x1x8x128xf32>
    %6 = vector.shape_cast %5 : vector<1x1x8x128xf32> to vector<8x128xf32>
    %c0_i32_7 = arith.constant 0 : i32
    %7 = vector.broadcast %c0_i32_7 : i32 to vector<8x128xi32>
    %8 = arith.cmpi eq, %4, %7 : vector<8x128xi32>
    %cst = arith.constant 0.000000e+00 : f32
    %9 = vector.broadcast %cst : f32 to vector<8x128xf32>
    %10 = arith.select %8, %6, %9 : vector<8x128xi1>, vector<8x128xf32>
    %c0_8 = arith.constant 0 : index
    %11 = memref.load %arg5[%c0_8] : memref<4xf32, #tpu.memory_space<smem>>
    %cst_9 = arith.constant 0.000000e+00 : f32
    %12 = vector.broadcast %11 : f32 to vector<8x128xf32>
    %13 = vector.broadcast %cst_9 : f32 to vector<8x128xf32>
    %14 = arith.select %8, %12, %13 : vector<8x128xi1>, vector<8x128xf32>
    %c0_10 = arith.constant 0 : index
    %c1 = arith.constant 1 : index
    %c0_11 = arith.constant 0 : index
    %c0_12 = arith.constant 0 : index
    %15 = vector.load %arg3[%c0_10, %c1, %c0_11, %c0_12] : memref<1x4x8x128xf32, #tpu.memory_space<vmem>>, vector<1x1x8x128xf32>
    %16 = vector.shape_cast %15 : vector<1x1x8x128xf32> to vector<8x128xf32>
    %17 = arith.maximumf %6, %16 : vector<8x128xf32>
    %c1_i32 = arith.constant 1 : i32
    %18 = vector.broadcast %c1_i32 : i32 to vector<8x128xi32>
    %19 = arith.cmpi eq, %4, %18 : vector<8x128xi32>
    %20 = arith.select %19, %16, %10 : vector<8x128xi1>, vector<8x128xf32>
    %c1_13 = arith.constant 1 : index
    %21 = memref.load %arg5[%c1_13] : memref<4xf32, #tpu.memory_space<smem>>
    %22 = vector.broadcast %21 : f32 to vector<8x128xf32>
    %23 = arith.select %19, %22, %14 : vector<8x128xi1>, vector<8x128xf32>
    %c0_14 = arith.constant 0 : index
    %c2 = arith.constant 2 : index
    %c0_15 = arith.constant 0 : index
    %c0_16 = arith.constant 0 : index
    %24 = vector.load %arg3[%c0_14, %c2, %c0_15, %c0_16] : memref<1x4x8x128xf32, #tpu.memory_space<vmem>>, vector<1x1x8x128xf32>
    %25 = vector.shape_cast %24 : vector<1x1x8x128xf32> to vector<8x128xf32>
    %26 = arith.maximumf %17, %25 : vector<8x128xf32>
    %c2_i32 = arith.constant 2 : i32
    %27 = vector.broadcast %c2_i32 : i32 to vector<8x128xi32>
    %28 = arith.cmpi eq, %4, %27 : vector<8x128xi32>
    %29 = arith.select %28, %25, %20 : vector<8x128xi1>, vector<8x128xf32>
    %c2_17 = arith.constant 2 : index
    %30 = memref.load %arg5[%c2_17] : memref<4xf32, #tpu.memory_space<smem>>
    %31 = vector.broadcast %30 : f32 to vector<8x128xf32>
    %32 = arith.select %28, %31, %23 : vector<8x128xi1>, vector<8x128xf32>
    %c0_18 = arith.constant 0 : index
    %c3 = arith.constant 3 : index
    %c0_19 = arith.constant 0 : index
    %c0_20 = arith.constant 0 : index
    %33 = vector.load %arg3[%c0_18, %c3, %c0_19, %c0_20] : memref<1x4x8x128xf32, #tpu.memory_space<vmem>>, vector<1x1x8x128xf32>
    %34 = vector.shape_cast %33 : vector<1x1x8x128xf32> to vector<8x128xf32>
    %35 = arith.maximumf %26, %34 : vector<8x128xf32>
    %c3_i32 = arith.constant 3 : i32
    %36 = vector.broadcast %c3_i32 : i32 to vector<8x128xi32>
    %37 = arith.cmpi eq, %4, %36 : vector<8x128xi32>
    %38 = arith.select %37, %34, %29 : vector<8x128xi1>, vector<8x128xf32>
    %c3_21 = arith.constant 3 : index
    %39 = memref.load %arg5[%c3_21] : memref<4xf32, #tpu.memory_space<smem>>
    %40 = vector.broadcast %39 : f32 to vector<8x128xf32>
    %41 = arith.select %37, %40, %32 : vector<8x128xi1>, vector<8x128xf32>
    %42 = arith.subf %6, %35 : vector<8x128xf32>
    %43 = math.exp %42 : vector<8x128xf32>
    %c0_22 = arith.constant 0 : index
    %c1_23 = arith.constant 1 : index
    %c0_24 = arith.constant 0 : index
    %c0_25 = arith.constant 0 : index
    %44 = vector.load %arg3[%c0_22, %c1_23, %c0_24, %c0_25] : memref<1x4x8x128xf32, #tpu.memory_space<vmem>>, vector<1x1x8x128xf32>
    %45 = vector.shape_cast %44 : vector<1x1x8x128xf32> to vector<8x128xf32>
    %46 = arith.subf %45, %35 : vector<8x128xf32>
    %47 = math.exp %46 : vector<8x128xf32>
    %48 = arith.addf %43, %47 : vector<8x128xf32>
    %c0_26 = arith.constant 0 : index
    %c2_27 = arith.constant 2 : index
    %c0_28 = arith.constant 0 : index
    %c0_29 = arith.constant 0 : index
    %49 = vector.load %arg3[%c0_26, %c2_27, %c0_28, %c0_29] : memref<1x4x8x128xf32, #tpu.memory_space<vmem>>, vector<1x1x8x128xf32>
    %50 = vector.shape_cast %49 : vector<1x1x8x128xf32> to vector<8x128xf32>
    %51 = arith.subf %50, %35 : vector<8x128xf32>
    %52 = math.exp %51 : vector<8x128xf32>
    %53 = arith.addf %48, %52 : vector<8x128xf32>
    %c0_30 = arith.constant 0 : index
    %c3_31 = arith.constant 3 : index
    %c0_32 = arith.constant 0 : index
    %c0_33 = arith.constant 0 : index
    %54 = vector.load %arg3[%c0_30, %c3_31, %c0_32, %c0_33] : memref<1x4x8x128xf32, #tpu.memory_space<vmem>>, vector<1x1x8x128xf32>
    %55 = vector.shape_cast %54 : vector<1x1x8x128xf32> to vector<8x128xf32>
    %56 = arith.subf %55, %35 : vector<8x128xf32>
    %57 = math.exp %56 : vector<8x128xf32>
    %58 = arith.addf %53, %57 : vector<8x128xf32>
    %59 = arith.subf %35, %38 : vector<8x128xf32>
    %60 = math.log %58 : vector<8x128xf32>
    %61 = arith.addf %59, %60 : vector<8x128xf32>
    %cst_34 = arith.constant 0.000000e+00 : f32
    %62 = vector.broadcast %cst_34 : f32 to vector<8x128xf32>
    %63 = arith.subf %62, %61 : vector<8x128xf32>
    %64 = math.exp %63 : vector<8x128xf32>
    %c-100_i32 = arith.constant -100 : i32
    %65 = vector.broadcast %c-100_i32 : i32 to vector<8x128xi32>
    %66 = arith.cmpi ne, %4, %65 : vector<8x128xi32>
    %cst_35 = arith.constant 1.000000e+00 : f32
    %67 = vector.broadcast %cst_35 : f32 to vector<8x128xf32>
    %68 = arith.subf %67, %64 : vector<8x128xf32>
    %cst_36 = arith.constant 1.000000e+00 : f32
    %69 = vector.broadcast %cst_36 : f32 to vector<8x128xf32>
    %70 = arith.subf %69, %64 : vector<8x128xf32>
    %71 = arith.mulf %68, %70 : vector<8x128xf32>
    %72 = arith.mulf %71, %41 : vector<8x128xf32>
    %c0_37 = arith.constant 0 : index
    %c0_38 = arith.constant 0 : index
    %c0_39 = arith.constant 0 : index
    %c0_40 = arith.constant 0 : index
    %73 = vector.load %arg6[%c0_37, %c0_38, %c0_39, %c0_40] : memref<1x1x8x128xf32, #tpu.memory_space<vmem>>, vector<1x1x8x128xf32>
    %74 = vector.shape_cast %73 : vector<1x1x8x128xf32> to vector<8x128xf32>
    %75 = arith.mulf %72, %61 : vector<8x128xf32>
    %cst_41 = arith.constant 0.000000e+00 : f32
    %76 = vector.broadcast %cst_41 : f32 to vector<8x128xf32>
    %77 = arith.select %66, %75, %76 : vector<8x128xi1>, vector<8x128xf32>
    %78 = arith.addf %74, %77 : vector<8x128xf32>
    %c0_42 = arith.constant 0 : index
    %c0_43 = arith.constant 0 : index
    %c0_44 = arith.constant 0 : index
    %c0_45 = arith.constant 0 : index
    %79 = vector.load %arg6[%c0_42, %c0_43, %c0_44, %c0_45] : memref<1x1x8x128xf32, #tpu.memory_space<vmem>>, vector<1x1x8x128xf32>
    %80 = vector.shape_cast %79 : vector<1x1x8x128xf32> to vector<8x128xf32>
    %81 = vector.shape_cast %78 : vector<8x128xf32> to vector<1x1x8x128xf32>
    tpu.vector_store %arg6[%c0_42, %c0_43, %c0_44, %c0_45], %81 {strides = array<i32>} : memref<1x1x8x128xf32, #tpu.memory_space<vmem>>, vector<1x1x8x128xf32>,
    %c0_46 = arith.constant 0 : index
    %c0_47 = arith.constant 0 : index
    %c0_48 = arith.constant 0 : index
    %c0_49 = arith.constant 0 : index
    %82 = vector.load %arg7[%c0_46, %c0_47, %c0_48, %c0_49] : memref<1x1x8x128xf32, #tpu.memory_space<vmem>>, vector<1x1x8x128xf32>
    %83 = vector.shape_cast %82 : vector<1x1x8x128xf32> to vector<8x128xf32>
    %cst_50 = arith.constant 0.000000e+00 : f32
    %84 = vector.broadcast %cst_50 : f32 to vector<8x128xf32>
    %85 = arith.select %66, %72, %84 : vector<8x128xi1>, vector<8x128xf32>
    %86 = arith.addf %83, %85 : vector<8x128xf32>
    %c0_51 = arith.constant 0 : index
    %c0_52 = arith.constant 0 : index
    %c0_53 = arith.constant 0 : index
    %c0_54 = arith.constant 0 : index
    %87 = vector.load %arg7[%c0_51, %c0_52, %c0_53, %c0_54] : memref<1x1x8x128xf32, #tpu.memory_space<vmem>>, vector<1x1x8x128xf32>
    %88 = vector.shape_cast %87 : vector<1x1x8x128xf32> to vector<8x128xf32>
    %89 = vector.shape_cast %86 : vector<8x128xf32> to vector<1x1x8x128xf32>
    tpu.vector_store %arg7[%c0_51, %c0_52, %c0_53, %c0_54], %89 {strides = array<i32>} : memref<1x1x8x128xf32, #tpu.memory_space<vmem>>, vector<1x1x8x128xf32>,
    return
  }
  func.func @transform_0(%arg0: i32, %arg1: i32, %arg2: i32) -> (i32, i32, i32, i32) {
    %c1_i32 = arith.constant 1 : i32
    %0 = arith.muli %arg1, %c1_i32 : i32
    %1 = arith.addi %0, %arg2 : i32
    %c0_i32 = arith.constant 0 : i32
    %2 = arith.minsi %1, %c0_i32 : i32
    %c0_i32_0 = arith.constant 0 : i32
    %c0_i32_1 = arith.constant 0 : i32
    %c0_i32_2 = arith.constant 0 : i32
    return %arg0, %c0_i32_0, %2, %c0_i32_1 : i32, i32, i32, i32
  }
  func.func @transform_1(%arg0: i32, %arg1: i32, %arg2: i32) -> (i32, i32, i32) {
    %c1_i32 = arith.constant 1 : i32
    %0 = arith.muli %arg1, %c1_i32 : i32
    %1 = arith.addi %0, %arg2 : i32
    %c0_i32 = arith.constant 0 : i32
    %2 = arith.minsi %1, %c0_i32 : i32
    %c0_i32_0 = arith.constant 0 : i32
    %c0_i32_1 = arith.constant 0 : i32
    return %arg0, %2, %c0_i32_0 : i32, i32, i32
  }
  func.func @transform_2(%arg0: i32, %arg1: i32, %arg2: i32) -> i32 {
    %c0_i32 = arith.constant 0 : i32
    %c0_i32_0 = arith.constant 0 : i32
    return %c0_i32 : i32
  }
  func.func @transform_3(%arg0: i32, %arg1: i32, %arg2: i32) -> (i32, i32, i32, i32) {
    %c0_i32 = arith.constant 0 : i32
    %c0_i32_0 = arith.constant 0 : i32
    %c0_i32_1 = arith.constant 0 : i32
    return %arg0, %arg1, %c0_i32, %c0_i32_0 : i32, i32, i32, i32
  }
  func.func @transform_4(%arg0: i32, %arg1: i32, %arg2: i32) -> (i32, i32, i32, i32) {
    %c0_i32 = arith.constant 0 : i32
    %c0_i32_0 = arith.constant 0 : i32
    %c0_i32_1 = arith.constant 0 : i32
    return %arg0, %arg1, %c0_i32, %c0_i32_0 : i32, i32, i32, i32
  }
}

</mosaic_0001>

<bundles_post_ra>
// kernel: weighted_focal_loss.1
= control target key start
LH: loop header
LB: loop body
LE: loop exit
PB: predicated region body
PF: predicated region fallthrough
CT: control target
= control target key end

     0   :  { %10 = vsyncpa [#allocation3], 0  ;;  %s696_s15 = smov 0   ;;  %s698_s16 = smov 0   ;;  %s752_s0 = inlined_call_operand.vmem [shape: f32[2,4,8,128], index: 0, kind: input, shape index: {}]   ;;  %s753_s1 = inlined_call_operand.vmem [shape: s32[2,8,128], index: 1, kind: input, shape index: {}]   ;;  %s754_s2 = inlined_call_operand.vmem [shape: f32[4], index: 2, kind: input, shape index: {}]   ;;  %s755_s3 = inlined_call_operand.vmem [shape: f32[2,1,8,128], index: 3, kind: output, shape index: {0}]   ;;  %s756_s4 = inlined_call_operand.vmem [shape: f32[2,1,8,128], index: 4, kind: output, shape index: {1}]  }
   0x1   :  { %s700_s17 = smov 0  }
   0x2 LB: > { %s558_s18 = sadd.s32 4294967295, %s668_s17   ;;  %s35_s19 = sadd.s32 1, %s664_s16  ;;  %s668_s17 = sphi %s700_s17, %s16_s17   ;;  %s664_s16 = sphi %s698_s16, %s758_s16   ;;  %s660_s15 = sphi %s696_s15, %s757_s15  }
   0x3   : > { %p37_p0 = scmp.ge.s32.totalorder %s35_s19, 2  ;;  %p560_p1 = scmp.ge.s32.totalorder %s668_s17, 1 }
   0x4   : > { %p185_p2 = scmp.lt.s32.totalorder %s668_s17, 3  ;;  %p587_p4 = scmp.eq.s32.totalorder %s558_s18, 0 }
   0x5   : > { %s760_s19 = smov (%p37_p0, %s35_s19), 0  ;;  %s197_s22 = sshll.u32 %s754_s2, 4  ;;  %s198_s22 = int_to_ptr.vmem [resolvable:$true] %s197_s22 }
   0x6   : > { %p186_p3 = pnand %p560_p1, %p185_p2  ;;  %s670_s23 = smov [#allocation2]  }
   0x8   : > { %p583_p5 = pneg %p186_p3  ;;  %243 = sbr.rel (%p186_p3) target bundleno = 78 (0x4e), region = 32 }
   0xa   : > { %p584_p6 = pnand %p587_p4, %p583_p5 }
   0xc   : > { %586 = dma.vmem_to_smem (!%p584_p6), %s198_s22, 16, %s670_s23, [#allocation3]  }
   0xd   : > { %655 = dma.done.wait (%p587_p4), [#allocation3], 16  }
   0xe   : > { %657 = vsyncadd (%p587_p4), [#allocation3], 4294967280 }
   0xf   : > { %250 = sfence }
  0x10   : > { %p299_p7 = scmp.lt.s32.totalorder %s660_s15, 1  ;;  %s347_s6 = sld [smem:[#allocation2]] }
  0x11   : > { %s571_s7 = sld [smem:[#allocation2 + $0x1]] }
  0x12   : > { %s762_s15 = smov (!%p299_p7, %s660_s15), 1  ;;  %s573_s8 = sld [smem:[#allocation2 + $0x2]] }
  0x13   : > { %s578_s24 = sshll.u32 %s762_s15, 5  ;;  %s721_s28 = sshll.u32 %s762_s15, 3 }
  0x14   : > { %s306_s27 = scalar_lea.vmem %s752_s0, %s578_s24  ;;  %s319_s5 = scalar_lea.vmem %s753_s1, %s721_s28 }
  0x15   : > { %v344_v0 = vld [vmem:[%s306_s27] sm:$0xff]  ;;  %v570_v1 = vld [vmem:[%s306_s27 + $0x8] sm:$0xff]  ;;  %v572_v3 = vld [vmem:[%s306_s27 + $0x10] sm:$0xff]  ;;  %s575_s9 = sld [smem:[#allocation2 + $0x3]]  ;;  %s336_s12 = scalar_lea.vmem %s756_s4, %s721_s28 }
  0x16   : > { %v352_v2 = vmax.f32 %v344_v0, %v570_v1  ;;  %v574_v4 = vld [vmem:[%s306_s27 + $0x18] sm:$0xff]  ;;  %v343_v15 = vld [vmem:[%s319_s5] sm:$0xff]  ;;  %v348_v31 = vstv %s347_s6  ;;  %s329_s15 = scalar_lea.vmem %s755_s3, %s721_s28 }
  0x17   : > { %vm345_vm0 = vcmp.eq.s32.totalorder %v343_v15, 0  ;;  %vm353_vm1 = vcmp.eq.s32.totalorder %v343_v15, 1  ;;  %vm361_vm2 = vcmp.eq.s32.totalorder %v343_v15, 2  ;;  %vm369_vm3 = vcmp.eq.s32.totalorder %v343_v15, 3 }
  0x18   : > { %v360_v5 = vmax.f32 %v352_v2, %v572_v3  ;;  %v346_v18 = vsel %vm345_vm0, %v344_v0, 0.0  ;;  %v349_v34 = vsel %vm345_vm0, %v348_v31, 0.0  ;;  %v356_v35 = vstv %s571_s7 }
  0x19   : > { %v354_v22 = vsel %vm353_vm1, %v570_v1, %v346_v18  ;;  %v357_v36 = vsel %vm353_vm1, %v356_v35, %v349_v34  ;;  %v364_v37 = vstv %s573_s8  ;;  %vm396_vm4 = vcmp.ne.s32.totalorder %v343_v15, 4294967196 }
  0x1a   : > { %v368_v6 = vmax.f32 %v360_v5, %v574_v4  ;;  %v362_v25 = vsel %vm361_vm2, %v572_v3, %v354_v22  ;;  %v365_v38 = vsel %vm361_vm2, %v364_v37, %v357_v36 }
  0x1b   : > { %v370_v26 = vsel %vm369_vm3, %v574_v4, %v362_v25  ;;  %v372_v39 = vstv %s575_s9 }
  0x1c   : > { %v374_v7 = vsub.f32 %v344_v0, %v368_v6  ;;  %v377_v8 = vsub.f32 %v570_v1, %v368_v6  ;;  %v381_v9 = vsub.f32 %v572_v3, %v368_v6  ;;  %v385_v10 = vsub.f32 %v574_v4, %v368_v6 }
  0x1d   : > { %v389_v27 = vsub.f32 %v368_v6, %v370_v26  ;;  %v373_v42 = vsel %vm369_vm3, %v372_v39, %v365_v38 }
  0x1e   : > { %v375_v11 = vmul.f32 1.442695, %v374_v7  ;;  %v378_v12 = vmul.f32 1.442695, %v377_v8  ;;  %v382_v13 = vmul.f32 1.442695, %v381_v9 }
  0x1f   : > { %v386_v14 = vmul.f32 1.442695, %v385_v10 }
  0x20   : > { %615 = vpow2.f32 %v375_v11 }
  0x21   : > { %617 = vpow2.f32 %v378_v12 }
  0x22   : > { %619 = vpow2.f32 %v382_v13 }
  0x23   : > { %621 = vpow2.f32 %v386_v14 }
  0x26   : > { %v616_v16 = vpop.eup %615 }
  0x27   : > { %v618_v17 = vpop.eup %617 }
  0x28   : > { %v620_v19 = vpop.eup %619  ;;  %v380_v20 = vadd.f32 %v618_v17, %v616_v16 }
  0x29   : > { %v622_v21 = vpop.eup %621 }
  0x2a   : > { %v384_v23 = vadd.f32 %v620_v19, %v380_v20 }
  0x2c   : > { %v388_v24 = vadd.f32 %v622_v21, %v384_v23 }
  0x2e   : > { %623 = vlog2.f32 %v388_v24 }
  0x34   : > { %v624_v28 = vpop.eup %623 }
  0x35   : > { %v391_v29 = vmul.f32 0.6931472, %v624_v28 }
  0x37   : > { %v392_v30 = vadd.f32 %v391_v29, %v389_v27 }
  0x39   : > { %v393_v32 = vsub.f32 0.0, %v392_v30 }
  0x3b   : > { %v394_v33 = vmul.f32 1.442695, %v393_v32 }
  0x3d   : > { %625 = vpow2.f32 %v394_v33 }
  0x43   : > { %v626_v40 = vpop.eup %625 }
  0x44   : > { %v397_v41 = vsub.f32 1.0, %v626_v40 }
  0x46   : > { %v398_v43 = vmul.f32 %v397_v41, %v397_v41 }
  0x48   : > { %v399_v44 = vmul.f32 %v398_v43, %v373_v42 }
  0x4a   : > { %v401_v45 = vmul.f32 %v399_v44, %v392_v30  ;;  %v406_v46 = vsel %vm396_vm4, %v399_v44, 0.0 }
  0x4b   : > { %408 = vst [vmem:[%s336_s12] sm:$0xff] %v406_v46 }
  0x4c   : > { %v402_v47 = vsel %vm396_vm4, %v401_v45, 0.0 }
  0x4d   : > { %404 = vst [vmem:[%s329_s15] sm:$0xff] %v402_v47 }
  0x4e PF: > { %s16_s17 = sadd.s32 1, %s668_s17   ;;  %s757_s15 = smov %s664_s16 }
  0x4f   : > { %p13_p8 = scmp.ge.s32.totalorder %s16_s17, 4   ;;  %s758_s16 = smov %s760_s19 }
  0x51   :  { %15 = sbr.rel (!%p13_p8) target bundleno = 2 (0x2), region = 89 }
  0x56   :  { %454 = vsyncpa [#allocation3], 1 }
  0x57   :  { %456 = vsyncpa [#allocation3 + $0x1], 1 }

</bundles_post_ra>
